<compile_context>
chip_gen: v6e
topology: v6e:2x2x1
jax: 0.10.0
libtpu: 0.0.40
codegen_flags: <defaults>
</compile_context>

<pallas_src>
import math

import jax
import jax.numpy as jnp
from jax import lax
from jax.experimental import pallas as pl
from jax.experimental.pallas import tpu as pltpu


_LANES = 128
_SUBLANES = 8
_MAX_TILE_ROWS = 2048   # 2048 x 128 f32 = 1 MiB per input tile -> near HBM roofline


def _round_up(x, m):
    return ((x + m - 1) // m) * m


def _make_kernel(*, inv_n, lamb, tile_rows, valid_rows, needs_mask):
    """All scalars (1/N, lamb, valid row count) baked in as Python constants."""

    def kernel(pred_ref, gt_ref, w_ref, out_ref, acc_ref):
        # Read grid position ONCE at the top level -- never inside pl.when
        # bodies (program_id has no lowering inside nested cond jaxprs on the
        # CPU/interpret fallback path).
        i = pl.program_id(0)
        last = pl.num_programs(0) - 1

        @pl.when(i == 0)
        def _init():
            acc_ref[...] = jnp.zeros_like(acc_ref)

        # Hot path: pure HBM streaming + VPU elementwise; native-dtype tiles
        # are upcast to f32 here.
        p = pred_ref[...].astype(jnp.float32)
        g = gt_ref[...].astype(jnp.float32)
        d = p - g
        dd = d * d
        if needs_mask:
            # Rows at/after `valid_rows` belong to block padding (out-of-bounds
            # DMA data is undefined) -> zero them. Static Python branch, so the
            # aligned case pays nothing.
            row_ids = lax.broadcasted_iota(jnp.int32, (tile_rows, 1), 0)
            limit = valid_rows - i * tile_rows
            dd = jnp.where(row_ids < limit, dd, 0.0)

        # Fold sublane groups with pure vreg adds (no XLU); keep a tiny
        # (8, 128) accumulator -> 4 KiB read-modify-write per step.
        acc_ref[...] += jnp.sum(
            dd.reshape(tile_rows // _SUBLANES, _SUBLANES, _LANES), axis=0)

        @pl.when(i == last)
        def _finalize():
            # One cross-lane/sublane reduction for the whole kernel.
            mse = jnp.sum(acc_ref[...]) * inv_n
            w = w_ref[...].astype(jnp.float32)
            reg = jnp.sum(w * w)
            val = mse + lamb * reg
            out_ref[...] = jnp.full(out_ref.shape, val, dtype=out_ref.dtype)

    return kernel


def loss_with_regularization(pred, gt, weight, lamb):
    """MSE(pred, gt) + lamb * sum(weight**2) via a streaming Pallas kernel."""
    assert pred.shape == gt.shape

    total = math.prod(pred.shape)

    # ---- lane-dense slab view of pred/gt -------------------------------------
    # Zero-copy reshape whenever total % 128 == 0 (common NN case); otherwise a
    # minimal zero pad to the next multiple of 128 (padded diffs are 0).
    pad = (-total) % _LANES

    def _to_slab(x):
        flat = x.reshape(-1)                  # free; keeps native dtype (bf16 stays bf16)
        if pad:
            flat = jnp.pad(flat, (0, pad))
        return flat.reshape(-1, _LANES)

    pred2 = _to_slab(pred)
    gt2 = _to_slab(gt)
    rows = pred2.shape[0]

    tile_rows = min(_MAX_TILE_ROWS, _round_up(rows, _SUBLANES))
    num_tiles = -(-rows // tile_rows)
    needs_mask = (rows % tile_rows) != 0      # partial last block -> mask garbage rows

    # ---- weight: tiny, lane-dense, resident in VMEM ---------------------------
    w_total = math.prod(weight.shape)
    w_pad = (-w_total) % (_SUBLANES * _LANES)
    w_flat = weight.reshape(-1)
    if w_pad:
        w_flat = jnp.pad(w_flat, (0, w_pad))  # zeros contribute 0 to sum(w^2)
    w2 = w_flat.reshape(-1, _LANES)
    w_rows = w2.shape[0]

    kernel = _make_kernel(
        inv_n=1.0 / float(total),
        lamb=float(lamb),
        tile_rows=tile_rows,
        valid_rows=rows,
        needs_mask=needs_mask,
    )

    cost = pl.CostEstimate(
        flops=3 * rows * _LANES + 3 * w_rows * _LANES,
        transcendentals=0,
        bytes_accessed=int(pred2.nbytes) + int(gt2.nbytes) + int(w2.nbytes)
        + _SUBLANES * _LANES * 4,
    )

    out = pl.pallas_call(
        kernel,
        out_shape=jax.ShapeDtypeStruct((_SUBLANES, _LANES), jnp.float32),
        grid=(num_tiles,),
        in_specs=[
            pl.BlockSpec((tile_rows, _LANES), lambda i: (i, 0)),   # pred tile
            pl.BlockSpec((tile_rows, _LANES), lambda i: (i, 0)),   # gt tile
            pl.BlockSpec((w_rows, _LANES), lambda i: (0, 0)),      # weight (resident)
        ],
        out_specs=pl.BlockSpec((_SUBLANES, _LANES), lambda i: (0, 0)),
        scratch_shapes=[pltpu.VMEM((_SUBLANES, _LANES), jnp.float32)],
        compiler_params=pltpu.CompilerParams(
            dimension_semantics=("arbitrary",),                    # streaming reduction axis
            vmem_limit_bytes=32 * 1024 * 1024,
        ),
        cost_estimate=cost,
    )(pred2, gt2, w2)

    return out[0, 0]


if __name__ == "__main__":
    key = jax.random.PRNGKey(0)
    k_pred, k_gt, k_w = jax.random.split(key, 3)

    # Small NCHW activations + conv-style weight, matching the module's forward.
    pred = jax.random.normal(k_pred, (2, 4, 16, 16), dtype=jnp.float32)
    gt = jax.random.normal(k_gt, (2, 4, 16, 16), dtype=jnp.float32)
    weight = jax.random.normal(k_w, (4, 4, 3, 3), dtype=jnp.float32) * 0.1
    lamb = 0.01

    result = jax.block_until_ready(loss_with_regularization(pred, gt, weight, lamb))
    ref = jnp.mean((pred - gt) ** 2) + lamb * jnp.sum(weight ** 2)
    assert jnp.allclose(result, ref, rtol=1e-5, atol=1e-5), (result, ref)

    # Exercise the non-128-multiple (masked partial tile) path.
    p2 = jax.random.normal(k_pred, (3, 5, 17, 19), dtype=jnp.float32)
    g2 = jax.random.normal(k_gt, (3, 5, 17, 19), dtype=jnp.float32)
    r2 = jax.block_until_ready(loss_with_regularization(p2, g2, weight, lamb))
    ref2 = jnp.mean((p2 - g2) ** 2) + lamb * jnp.sum(weight ** 2)
    assert jnp.allclose(r2, ref2, rtol=1e-5, atol=1e-5), (r2, ref2)

    # Exercise the multi-tile streaming path (zero-copy slab, 2 grid steps).
    p3 = jax.random.normal(k_pred, (8, 16, 32, 128), dtype=jnp.float32)
    g3 = jax.random.normal(k_gt, (8, 16, 32, 128), dtype=jnp.float32)
    r3 = jax.block_until_ready(loss_with_regularization(p3, g3, weight, lamb))
    ref3 = jnp.mean((p3 - g3) ** 2) + lamb * jnp.sum(weight ** 2)
    assert jnp.allclose(r3, ref3, rtol=1e-4, atol=1e-6), (r3, ref3)

    print("KERNEL_OK")
</pallas_src>

<mosaic_0001>
module attributes {stable_mosaic.version = 11 : i64} {
  func.func @kernel(%arg0: i32, %arg1: memref<16x128xf32, #tpu.memory_space<vmem>>, %arg2: memref<16x128xf32, #tpu.memory_space<vmem>>, %arg3: memref<8x128xf32, #tpu.memory_space<vmem>>, %arg4: memref<8x128xf32, #tpu.memory_space<vmem>>, %arg5: memref<8x128xf32, #tpu.memory_space<vmem>>) attributes {dimension_semantics = [#tpu.dimension_semantics<arbitrary>], iteration_bounds = array<i64: 1>, scalar_prefetch = 0 : i64, scratch_operands = 1 : i64, tpu.core_type = #tpu.core_type<tc>, window_params = [{transform_indices = @transform_0, window_bounds = array<i64: 16, 128>}, {transform_indices = @transform_1, window_bounds = array<i64: 16, 128>}, {pipeline_mode = #tpu.pipeline_mode<synchronous>, transform_indices = @transform_2, window_bounds = array<i64: 8, 128>}, {pipeline_mode = #tpu.pipeline_mode<synchronous>, transform_indices = @transform_3, window_bounds = array<i64: 8, 128>}]} {
    %c0_i32 = arith.constant 0 : i32
    %0 = arith.cmpi eq, %arg0, %c0_i32 : i32
    %1 = arith.extui %0 : i1 to i32
    %c0_i32_0 = arith.constant 0 : i32
    %2 = arith.cmpi ne, %1, %c0_i32_0 : i32
    scf.if %2 {
      %cst_10 = arith.constant 0.000000e+00 : f32
      %15 = vector.broadcast %cst_10 : f32 to vector<8x128xf32>
      %c0_11 = arith.constant 0 : index
      %c0_12 = arith.constant 0 : index
      %16 = vector.load %arg5[%c0_11, %c0_12] : memref<8x128xf32, #tpu.memory_space<vmem>>, vector<8x128xf32>
      tpu.vector_store %arg5[%c0_11, %c0_12], %15 {strides = array<i32>} : memref<8x128xf32, #tpu.memory_space<vmem>>, vector<8x128xf32>,
    } else {
    }
    %c0 = arith.constant 0 : index
    %c0_1 = arith.constant 0 : index
    %3 = vector.load %arg1[%c0, %c0_1] : memref<16x128xf32, #tpu.memory_space<vmem>>, vector<16x128xf32>
    %c0_2 = arith.constant 0 : index
    %c0_3 = arith.constant 0 : index
    %4 = vector.load %arg2[%c0_2, %c0_3] : memref<16x128xf32, #tpu.memory_space<vmem>>, vector<16x128xf32>
    %5 = arith.subf %3, %4 : vector<16x128xf32>
    %6 = arith.mulf %5, %5 : vector<16x128xf32>
    %c0_4 = arith.constant 0 : index
    %c0_5 = arith.constant 0 : index
    %7 = vector.load %arg5[%c0_4, %c0_5] : memref<8x128xf32, #tpu.memory_space<vmem>>, vector<8x128xf32>
    %8 = vector.shape_cast %6 : vector<16x128xf32> to vector<2x8x128xf32>
    %cst = arith.constant dense<0.000000e+00> : vector<8x128xf32>
    %9 = vector.multi_reduction <add>, %8, %cst [0] : vector<2x8x128xf32> to vector<8x128xf32>
    %10 = arith.addf %7, %9 : vector<8x128xf32>
    %c0_6 = arith.constant 0 : index
    %c0_7 = arith.constant 0 : index
    %11 = vector.load %arg5[%c0_6, %c0_7] : memref<8x128xf32, #tpu.memory_space<vmem>>, vector<8x128xf32>
    tpu.vector_store %arg5[%c0_6, %c0_7], %10 {strides = array<i32>} : memref<8x128xf32, #tpu.memory_space<vmem>>, vector<8x128xf32>,
    %c0_i32_8 = arith.constant 0 : i32
    %12 = arith.cmpi eq, %arg0, %c0_i32_8 : i32
    %13 = arith.extui %12 : i1 to i32
    %c0_i32_9 = arith.constant 0 : i32
    %14 = arith.cmpi ne, %13, %c0_i32_9 : i32
    scf.if %14 {
      %c0_10 = arith.constant 0 : index
      %c0_11 = arith.constant 0 : index
      %15 = vector.load %arg5[%c0_10, %c0_11] : memref<8x128xf32, #tpu.memory_space<vmem>>, vector<8x128xf32>
      %16 = vector.shape_cast %15 : vector<8x128xf32> to vector<1x8x128xf32>
      %cst_12 = arith.constant dense<0.000000e+00> : vector<1xf32>
      %17 = vector.multi_reduction <add>, %16, %cst_12 [1, 2] : vector<1x8x128xf32> to vector<1xf32>
      %18 = vector.shape_cast %17 : vector<1xf32> to vector<1x1x1xf32>
      %19 = vector.extract %18[0, 0, 0] : f32 from vector<1x1x1xf32>
      %cst_13 = arith.constant 4.8828125E-4 : f32
      %20 = arith.mulf %19, %cst_13 : f32
      %c0_14 = arith.constant 0 : index
      %c0_15 = arith.constant 0 : index
      %21 = vector.load %arg3[%c0_14, %c0_15] : memref<8x128xf32, #tpu.memory_space<vmem>>, vector<8x128xf32>
      %22 = arith.mulf %21, %21 : vector<8x128xf32>
      %23 = vector.shape_cast %22 : vector<8x128xf32> to vector<1x8x128xf32>
      %cst_16 = arith.constant dense<0.000000e+00> : vector<1xf32>
      %24 = vector.multi_reduction <add>, %23, %cst_16 [1, 2] : vector<1x8x128xf32> to vector<1xf32>
      %25 = vector.shape_cast %24 : vector<1xf32> to vector<1x1x1xf32>
      %26 = vector.extract %25[0, 0, 0] : f32 from vector<1x1x1xf32>
      %cst_17 = arith.constant 0.00999999977 : f32
      %27 = arith.mulf %cst_17, %26 : f32
      %28 = arith.addf %20, %27 : f32
      %29 = vector.broadcast %28 : f32 to vector<8x128xf32>
      %c0_18 = arith.constant 0 : index
      %c0_19 = arith.constant 0 : index
      %30 = vector.load %arg4[%c0_18, %c0_19] : memref<8x128xf32, #tpu.memory_space<vmem>>, vector<8x128xf32>
      tpu.vector_store %arg4[%c0_18, %c0_19], %29 {strides = array<i32>} : memref<8x128xf32, #tpu.memory_space<vmem>>, vector<8x128xf32>,
    } else {
    }
    return
  }
  func.func @transform_0(%arg0: i32) -> (i32, i32) {
    %c0_i32 = arith.constant 0 : i32
    %c0_i32_0 = arith.constant 0 : i32
    return %arg0, %c0_i32 : i32, i32
  }
  func.func @transform_1(%arg0: i32) -> (i32, i32) {
    %c0_i32 = arith.constant 0 : i32
    %c0_i32_0 = arith.constant 0 : i32
    return %arg0, %c0_i32 : i32, i32
  }
  func.func @transform_2(%arg0: i32) -> (i32, i32) {
    %c0_i32 = arith.constant 0 : i32
    %c0_i32_0 = arith.constant 0 : i32
    %c0_i32_1 = arith.constant 0 : i32
    return %c0_i32, %c0_i32_0 : i32, i32
  }
  func.func @transform_3(%arg0: i32) -> (i32, i32) {
    %c0_i32 = arith.constant 0 : i32
    %c0_i32_0 = arith.constant 0 : i32
    %c0_i32_1 = arith.constant 0 : i32
    return %c0_i32, %c0_i32_0 : i32, i32
  }
}

</mosaic_0001>

<bundles_post_ra>
// kernel: tpu_custom_call.1
= control target key start
LH: loop header
LB: loop body
LE: loop exit
PB: predicated region body
PF: predicated region fallthrough
CT: control target
= control target key end

     0   :  { %8 = vsyncpa [#allocation4], 0  ;;  %s250_s0 = inlined_call_operand.hbm [shape: f32[16,128], index: 0, kind: input, shape index: {}]   ;;  %s251_s1 = inlined_call_operand.hbm [shape: f32[16,128], index: 1, kind: input, shape index: {}]   ;;  %s252_s2 = inlined_call_operand.hbm [shape: f32[8,128], index: 2, kind: input, shape index: {}]   ;;  %s253_s3 = inlined_call_operand.hbm [shape: f32[8,128], index: 3, kind: output, shape index: {}]  }
   0x1   :  { %9 = vsyncpa [#allocation7], 0 }
   0x2   :  { %10 = vsyncpa [#allocation5], 0  ;;  %s212_s12 = smov [#allocation6]   ;;  %s213_s14 = smov [#allocation3]  }
   0x3   :  { %s28_s13 = sshll.u32 %s212_s12, 4  ;;  %s16_s15 = sshll.u32 %s213_s14, 4  ;;  %s29_s13 = int_to_ptr.vmem [resolvable:$true] %s28_s13  ;;  %s17_s15 = int_to_ptr.vmem [resolvable:$true] %s16_s15 }
   0x4   :  { %s134_s16 = scalar_lea.vmem %s29_s13, 256  ;;  %p139_p1 = scmp.lt.s32.totalorder %s29_s13, %s29_s13 }
   0x5   :  { %p135_p0 = scmp.ne.s32.totalorder %s29_s13, %s134_s16  ;;  %p140_p2 = scmp.lt.s32.totalorder %s134_s16, %s134_s16 }
   0x7   :  { %p141_p3 = por %p140_p2, %p139_p1 }
   0x9   :  { %p142_p4 = pnand %p141_p3, %p135_p0 }
   0xb   :  { %145 = shalt.err (!%p142_p4)
}
   0xc   :  { %s214_s17 = smov 128   ;;  %s215_s18 = smov 8  }
   0xd   :  { %34 = dma.hbm_to_vmem [thread:$0]  %s251_s1, 256, %s29_s13, [#allocation7], %s214_s17, %s214_s17, %s215_s18  }
   0xe   :  { %s154_s21 = scalar_lea.vmem %s17_s15, 256  ;;  %p159_p6 = scmp.lt.s32.totalorder %s17_s15, %s17_s15 }
   0xf   :  { %p155_p5 = scmp.ne.s32.totalorder %s17_s15, %s154_s21  ;;  %p160_p7 = scmp.lt.s32.totalorder %s154_s21, %s154_s21 }
  0x11   :  { %p161_p8 = por %p160_p7, %p159_p6 }
  0x13   :  { %p162_p9 = pnand %p161_p8, %p155_p5 }
  0x15   :  { %165 = shalt.err (!%p162_p9)
}
  0x16   :  { %22 = dma.hbm_to_vmem [thread:$0]  %s250_s0, 256, %s17_s15, [#allocation4], %s214_s17, %s214_s17, %s215_s18  }
  0x17   :  { %s216_s24 = smov [#allocation8]  }
  0x18   :  { %s41_s25 = sshll.u32 %s216_s24, 4  ;;  %s42_s25 = int_to_ptr.vmem [resolvable:$true] %s41_s25 }
  0x19   :  { %s174_s26 = scalar_lea.vmem %s42_s25, 128  ;;  %p179_p11 = scmp.lt.s32.totalorder %s42_s25, %s42_s25 }
  0x1a   :  { %p175_p10 = scmp.ne.s32.totalorder %s42_s25, %s174_s26  ;;  %p180_p12 = scmp.lt.s32.totalorder %s174_s26, %s174_s26 }
  0x1c   :  { %p181_p13 = por %p180_p12, %p179_p11 }
  0x1e   :  { %p182_p0 = pnand %p181_p13, %p175_p10 }
  0x20   :  { %185 = shalt.err (!%p182_p0)
}
  0x21   :  { %44 = dma.hbm_to_vmem [thread:$0]  %s252_s2, 128, %s42_s25, [#allocation7]  }
  0x22   :  { %206 = dma.done.wait [#allocation4], 256  }
  0x23   :  { %207 = vsyncadd [#allocation4], 4294967040 }
  0x24   :  { %208 = dma.done.wait [#allocation7], 384  }
  0x25   :  { %209 = vsyncadd [#allocation7], 4294966912  ;;  %v59_v0 = vld [vmem:[#allocation3] sm:$0xff]  ;;  %v60_v1 = vld [vmem:[#allocation3 + $0x8] sm:$0xff]  ;;  %s217_s30 = smov [#allocation9]  }
  0x26   :  { %v61_v2 = vld [vmem:[#allocation6] sm:$0xff]  ;;  %v62_v3 = vld [vmem:[#allocation6 + $0x8] sm:$0xff]  ;;  %v85_v8 = vld [vmem:[#allocation8] sm:$0xff]  ;;  %s106_s4 = sshll.u32 %s217_s30, 4  ;;  %s107_s4 = int_to_ptr.vmem [resolvable:$true] %s106_s4 }
  0x27   :  { %v63_v4 = vsub.f32 %v59_v0, %v61_v2  ;;  %v64_v5 = vsub.f32 %v60_v1, %v62_v3  ;;  %v86_v10 = vmul.f32 %v85_v8, %v85_v8  ;;  %s186_s6 = scalar_lea.vmem %s107_s4, 128  ;;  %p191_p2 = scmp.lt.s32.totalorder %s107_s4, %s107_s4 }
  0x28   :  { %p187_p1 = scmp.ne.s32.totalorder %s107_s4, %s186_s6  ;;  %p192_p3 = scmp.lt.s32.totalorder %s186_s6, %s186_s6 }
  0x29   :  { %v65_v6 = vmul.f32 %v63_v4, %v63_v4  ;;  %v66_v7 = vmul.f32 %v64_v5, %v64_v5 }
  0x2a   :  { %p193_p4 = por %p192_p3, %p191_p2 }
  0x2b   :  { %v68_v9 = vadd.f32 %v66_v7, %v65_v6 }
  0x2c   :  { %p194_p5 = pnand %p193_p4, %p187_p1 }
  0x2d   :  { %75 = vadd.xlane.f32.xlu0 %v68_v9 }
  0x31   :  { %87 = vadd.xlane.f32.xlu0 %v86_v10 }
  0xb6   :  { %v76_v11 = vpop.xlane.xlu0 %75 }
  0xb7   :  { %v77_v12 = vrot.slane %v76_v11, 4 }
  0xb9   :  { %v78_v13 = vadd.f32 %v77_v12, %v76_v11 }
  0xba   :  { %v88_v14 = vpop.xlane.xlu0 %87 }
  0xbb   :  { %v79_v15 = vrot.slane %v78_v13, 2  ;;  %v89_v16 = vrot.slane %v88_v14, 4 }
  0xbd   :  { %v90_v17 = vadd.f32 %v89_v16, %v88_v14  ;;  %v80_v18 = vadd.f32 %v79_v15, %v78_v13 }
  0xbf   :  { %v91_v19 = vrot.slane %v90_v17, 2  ;;  %v81_v20 = vrot.slane %v80_v18, 1 }
  0xc1   :  { %v92_v21 = vadd.f32 %v91_v19, %v90_v17  ;;  %v82_v22 = vadd.f32 %v81_v20, %v80_v18 }
  0xc3   :  { %116 = vpush %v82_v22  ;;  %v93_v23 = vrot.slane %v92_v21, 1 }
  0xc5   :  { %v94_v24 = vadd.f32 %v93_v23, %v92_v21 }
  0xc7   :  { %118 = vpush %v94_v24 }
  0xf4   :  { %s117_s0 = spop %116 }
  0xf5   :  { %s84_s2 = smul.f32 0.00048828125, %s117_s0 }
  0xf8   :  { %s119_s28 = spop %118 }
  0xf9   :  { %s96_s29 = smul.f32 0.01, %s119_s28 }
  0xfb   :  { %s97_s5 = sadd.f32 %s96_s29, %s84_s2 }
  0xfd   :  { %v98_v25 = vstv %s97_s5 }
  0xfe   :  { %99 = vst [vmem:[#allocation9] sm:$0xff] %v98_v25 }
  0xff   :  { %197 = shalt.err (!%p194_p5)
}
 0x100   :  { %109 = dma.vmem_to_hbm [thread:$0]  %s107_s4, 128, %s253_s3, [#allocation5]  }
 0x101   :  { %210 = dma.done.wait [#allocation5], 128  }
 0x102   :  { %211 = vsyncadd [#allocation5], 4294967168 }
 0x103   :  { %113 = vsyncpa [#allocation4], 1 }
 0x104   :  { %114 = vsyncpa [#allocation7], 1 }
 0x105   :  { %115 = vsyncpa [#allocation5], 1 }

</bundles_post_ra>
